<compile_context>
chip_gen: v7x
topology: tpu7x:2x2x1
jax: 0.10.0
libtpu: 0.0.40
codegen_flags: <defaults>
</compile_context>

<pallas_src>
import jax
import jax.numpy as jnp
from jax import lax
from jax.experimental import pallas as pl
from jax.experimental.pallas import tpu as pltpu


# ---------------------------------------------------------------------------
# Kernel
# ---------------------------------------------------------------------------
def _focal_tversky_partials_kernel(x_ref, t_ref, acc_ref):
    # x_ref: [C, tile_h, Wp] logits (native dtype); t_ref: [tile_h, Wp] int labels.
    # acc_ref: [4, C, Wp] f32 accumulator, resident across the H-tile grid axis.
    @pl.when(pl.program_id(2) == 0)
    def _init():
        acc_ref[...] = jnp.zeros_like(acc_ref)

    x = x_ref[...].astype(jnp.float32)              # [C, tH, Wp]
    t = t_ref[...].astype(jnp.int32)                # [tH, Wp]

    # numerically stable softmax over the class axis (axis 0)
    m = jnp.max(x, axis=0, keepdims=True)
    e = jnp.exp(x - m)
    inv = pl.reciprocal(jnp.sum(e, axis=0, keepdims=True), approx=False)  # exact
    p = e * inv                                     # [C, tH, Wp]

    # one-hot as a broadcast compare against a [C,1,1] class iota
    # (never materialized as an f32 tensor; no full-shape iota)
    ids = lax.broadcasted_iota(jnp.int32, (x.shape[0], 1, 1), 0)
    hot = ids == t[None, :, :]                      # bool [C, tH, Wp]

    # partial reductions over the H tile (axis 1) -> [C, Wp]
    tp = jnp.sum(jnp.where(hot, p, 0.0), axis=1)    # sum(probas * one_hot)
    ps = jnp.sum(p, axis=1)                         # sum(probas)           -> FP = ps - tp
    cn = jnp.sum(jnp.where(hot, 1.0, 0.0), axis=1)  # sum(one_hot)
    xs = jnp.sum(jnp.where(hot, x, 0.0), axis=1)    # sum(one_hot * inputs) -> FN = cn - xs

    acc_ref[0] = acc_ref[0] + tp
    acc_ref[1] = acc_ref[1] + ps
    acc_ref[2] = acc_ref[2] + cn
    acc_ref[3] = acc_ref[3] + xs


# ---------------------------------------------------------------------------
# Tiling helpers
# ---------------------------------------------------------------------------
def _vmem_limit_bytes():
    """Generation-aware VMEM limit: ~3/4 of physical VMEM (96 MiB on 128 MiB
    v5e/v6e, 48 MiB on 64 MiB-per-TC v7x), with a conservative fallback."""
    cap = 64 * 1024 * 1024  # conservative default (v7x: 64 MiB per TensorCore)
    try:
        info = pltpu.get_tpu_info()
        cap = int(getattr(info, "vmem_capacity_bytes", cap)) or cap
    except Exception:
        pass
    return max(32 * 1024 * 1024, min(cap * 3 // 4, 100 * 1024 * 1024))


def _pick_lane_pack(H, W, max_lanes=4096):
    """Smallest g dividing H that makes the packed lane dim g*W a multiple of 128
    (full lane utilization); otherwise the smallest g reaching >= 128 lanes."""
    if W % 128 == 0:
        return 1
    divisors = [g for g in range(1, H + 1) if H % g == 0]
    for g in divisors:
        if (g * W) % 128 == 0 and g * W <= max_lanes:
            return g
    for g in divisors:
        if g * W >= 128:
            return g
    return divisors[-1]  # == H


def _pick_tile_h(Hg, budget_rows, sub):
    """Largest tile_h dividing Hg that is sublane-aligned (multiple of `sub`) or
    equal to Hg, preferring tiles within the per-step VMEM row budget."""
    if Hg <= budget_rows:
        return Hg
    best = 0
    th = sub
    while th <= min(Hg - 1, budget_rows):
        if Hg % th == 0:
            best = th
        th += sub
    if best:
        return best
    # nothing aligned fits the budget: take the smallest aligned divisor
    # (correctness first; the compiler just gets less buffering headroom)
    th = sub
    while th < Hg:
        if Hg % th == 0:
            return th
        th += sub
    return Hg


# ---------------------------------------------------------------------------
# Wrapper
# ---------------------------------------------------------------------------
def focal_tversky_loss(inputs, targets, alpha=0.25, beta=0.6, gamma=2, smooth=1.0,
                       tile_h=None, lane_pack=None):
    """inputs: [B, C, H, W] float logits; targets: [B, H, W] int labels -> scalar f32."""
    B, C, H, W = inputs.shape
    targets = targets.astype(jnp.int32)

    # ---- lane-dense packing: fold g consecutive H rows into the lane dim ----
    g = lane_pack if lane_pack is not None else _pick_lane_pack(H, W)
    assert H % g == 0, "lane_pack must divide H"
    Hg, Wp = H // g, g * W
    x = inputs.reshape(B, C, Hg, Wp)
    t = targets.reshape(B, Hg, Wp)

    # ---- VMEM-aware tile size (real per-step footprint, not a flat guess) ----
    in_bytes = jnp.dtype(inputs.dtype).itemsize
    sub = {1: 32, 2: 16}.get(in_bytes, 8)           # packed-dtype sublane granularity
    vmem_limit = _vmem_limit_bytes()
    step_budget = int(vmem_limit * 0.55)
    # 2x double-buffered native logits + label blocks, ~6 f32-sized temporaries
    # (x cast, e, p, hot, two masked selects), double-buffered f32 accumulator.
    per_row = Wp * (C * (2 * in_bytes + 6 * 4) + 2 * 4)
    fixed = 2 * 4 * C * Wp * 4
    budget_rows = max(1, (step_budget - fixed) // per_row)
    if tile_h is None:
        tile_h = _pick_tile_h(Hg, budget_rows, sub)
    assert Hg % tile_h == 0, "tile_h must divide H // lane_pack (no ragged tail)"
    n_h = Hg // tile_h

    # ---- keep both TensorCores busy on v7x even when B == 1 ----
    n_split = 2 if (B == 1 and n_h % 2 == 0 and n_h >= 2) else 1
    n_h_inner = n_h // n_split

    partials = pl.pallas_call(
        _focal_tversky_partials_kernel,
        out_shape=jax.ShapeDtypeStruct((B, n_split, 4, C, Wp), jnp.float32),
        grid=(B, n_split, n_h_inner),
        in_specs=[
            # logits block [C, tile_h, Wp]; batch dim squeezed out
            pl.BlockSpec((None, C, tile_h, Wp),
                         lambda b, s, h: (b, 0, s * n_h_inner + h, 0)),
            # label block [tile_h, Wp]
            pl.BlockSpec((None, tile_h, Wp),
                         lambda b, s, h: (b, s * n_h_inner + h, 0)),
        ],
        # per-(batch, split) accumulator block: same block index across the H-tile axis
        out_specs=pl.BlockSpec((None, None, 4, C, Wp),
                               lambda b, s, h: (b, s, 0, 0, 0)),
        compiler_params=pltpu.CompilerParams(
            dimension_semantics=("parallel", "parallel", "arbitrary"),
            vmem_limit_bytes=int(vmem_limit),
        ),
    )(x, t)

    # ---- finalize on tiny tensors: exact reference formula ----
    acc = jnp.sum(partials, axis=(0, 1))             # [4, C, Wp]
    acc = acc.reshape(4, C, g, W).sum(axis=2)        # un-fold lane packing -> [4, C, W]
    tp, ps, cn, xs = acc[0], acc[1], acc[2], acc[3]
    fp = ps - tp                                     # sum((1 - one_hot) * probas)
    fn = cn - xs                                     # sum(one_hot * (1 - inputs))  (raw logits)
    denom_mean = jnp.mean(tp + beta * fp + (1.0 - beta) * fn + smooth)
    tversky = (tp + smooth) / denom_mean             # [C, W]
    return jnp.mean(alpha * (1.0 - tversky) ** gamma)


# ---------------------------------------------------------------------------
# Pure-JAX reference (mirror of the PyTorch module) for the correctness check
# ---------------------------------------------------------------------------
def _focal_tversky_ref(inputs, targets, alpha=0.25, beta=0.6, gamma=2, smooth=1.0):
    C = inputs.shape[1]
    one_hot = jnp.transpose(jax.nn.one_hot(targets, C, dtype=inputs.dtype), (0, 3, 1, 2))
    probas = jax.nn.softmax(inputs, axis=1)
    dims = (0, 2)
    TP = jnp.sum(probas * one_hot, axis=dims)
    FP = jnp.sum((1.0 - one_hot) * probas, axis=dims)
    FN = jnp.sum(one_hot * (1.0 - inputs), axis=dims)   # raw logits, as in the reference
    tversky = (TP + smooth) / jnp.mean(TP + beta * FP + (1.0 - beta) * FN + smooth)
    return jnp.mean(alpha * (1.0 - tversky) ** gamma)


if __name__ == "__main__":
    key = jax.random.PRNGKey(0)
    k1, k2 = jax.random.split(key)
    B, C, H, W = 2, 4, 16, 16
    inputs = jax.random.normal(k1, (B, C, H, W), dtype=jnp.float32)
    targets = jax.random.randint(k2, (B, H, W), 0, C, dtype=jnp.int32)

    loss = focal_tversky_loss(inputs, targets)
    jax.block_until_ready(loss)

    ref = _focal_tversky_ref(inputs, targets)
    assert jnp.allclose(loss, ref, atol=1e-5, rtol=1e-5), (loss, ref)

    print("KERNEL_OK")
</pallas_src>

<mosaic_0001>
module attributes {stable_mosaic.version = 11 : i64} {
  func.func @_focal_tversky_partials_kernel(%arg0: i32, %arg1: i32, %arg2: i32, %arg3: memref<1x4x2x128xf32, #tpu.memory_space<vmem>>, %arg4: memref<1x2x128xi32, #tpu.memory_space<vmem>>, %arg5: memref<1x1x4x4x128xf32, #tpu.memory_space<vmem>>) attributes {dimension_semantics = [#tpu.dimension_semantics<parallel>, #tpu.dimension_semantics<parallel>, #tpu.dimension_semantics<arbitrary>], iteration_bounds = array<i64: 2, 1, 1>, scalar_prefetch = 0 : i64, scratch_operands = 0 : i64, tpu.core_type = #tpu.core_type<tc>, window_params = [{transform_indices = @transform_0, window_bounds = array<i64: 1, 4, 2, 128>}, {transform_indices = @transform_1, window_bounds = array<i64: 1, 2, 128>}, {transform_indices = @transform_2, window_bounds = array<i64: 1, 1, 4, 4, 128>}]} {
    %c0_i32 = arith.constant 0 : i32
    %0 = arith.cmpi eq, %arg2, %c0_i32 : i32
    %1 = arith.extui %0 : i1 to i32
    %c0_i32_0 = arith.constant 0 : i32
    %2 = arith.cmpi ne, %1, %c0_i32_0 : i32
    scf.if %2 {
      %cst_53 = arith.constant 0.000000e+00 : f32
      %57 = vector.broadcast %cst_53 : f32 to vector<4x4x128xf32>
      %c0_54 = arith.constant 0 : index
      %c0_55 = arith.constant 0 : index
      %c0_56 = arith.constant 0 : index
      %c0_57 = arith.constant 0 : index
      %c0_58 = arith.constant 0 : index
      %58 = vector.load %arg5[%c0_54, %c0_55, %c0_56, %c0_57, %c0_58] : memref<1x1x4x4x128xf32, #tpu.memory_space<vmem>>, vector<1x1x4x4x128xf32>
      %59 = vector.shape_cast %58 : vector<1x1x4x4x128xf32> to vector<4x4x128xf32>
      %60 = vector.shape_cast %57 : vector<4x4x128xf32> to vector<1x1x4x4x128xf32>
      tpu.vector_store %arg5[%c0_54, %c0_55, %c0_56, %c0_57, %c0_58], %60 {strides = array<i32>} : memref<1x1x4x4x128xf32, #tpu.memory_space<vmem>>, vector<1x1x4x4x128xf32>,
    } else {
    }
    %c0 = arith.constant 0 : index
    %c0_1 = arith.constant 0 : index
    %c0_2 = arith.constant 0 : index
    %c0_3 = arith.constant 0 : index
    %3 = vector.load %arg3[%c0, %c0_1, %c0_2, %c0_3] : memref<1x4x2x128xf32, #tpu.memory_space<vmem>>, vector<1x4x2x128xf32>
    %4 = vector.shape_cast %3 : vector<1x4x2x128xf32> to vector<4x2x128xf32>
    %c0_4 = arith.constant 0 : index
    %c0_5 = arith.constant 0 : index
    %c0_6 = arith.constant 0 : index
    %5 = vector.load %arg4[%c0_4, %c0_5, %c0_6] : memref<1x2x128xi32, #tpu.memory_space<vmem>>, vector<1x2x128xi32>
    %6 = vector.shape_cast %5 : vector<1x2x128xi32> to vector<2x128xi32>
    %cst = arith.constant dense<0xFF800000> : vector<2x128xf32>
    %7 = vector.multi_reduction <maximumf>, %4, %cst [0] : vector<4x2x128xf32> to vector<2x128xf32>
    %8 = vector.shape_cast %7 : vector<2x128xf32> to vector<1x2x128xf32>
    %9 = vector.broadcast %8 : vector<1x2x128xf32> to vector<4x2x128xf32>
    %10 = arith.subf %4, %9 : vector<4x2x128xf32>
    %11 = math.exp %10 : vector<4x2x128xf32>
    %cst_7 = arith.constant dense<0.000000e+00> : vector<2x128xf32>
    %12 = vector.multi_reduction <add>, %11, %cst_7 [0] : vector<4x2x128xf32> to vector<2x128xf32>
    %13 = vector.shape_cast %12 : vector<2x128xf32> to vector<1x2x128xf32>
    %14 = tpu.reciprocal %13 : vector<1x2x128xf32> -> vector<1x2x128xf32>
    %15 = vector.broadcast %14 : vector<1x2x128xf32> to vector<4x2x128xf32>
    %16 = arith.mulf %11, %15 : vector<4x2x128xf32>
    %17 = tpu.iota {dimensions = array<i32: 0>} : vector<4x1x1xi32>
    %18 = vector.shape_cast %6 : vector<2x128xi32> to vector<1x2x128xi32>
    %19 = vector.broadcast %17 : vector<4x1x1xi32> to vector<4x2x128xi32>
    %20 = vector.broadcast %18 : vector<1x2x128xi32> to vector<4x2x128xi32>
    %21 = arith.cmpi eq, %19, %20 : vector<4x2x128xi32>
    %cst_8 = arith.constant 0.000000e+00 : f32
    %22 = vector.broadcast %cst_8 : f32 to vector<4x2x128xf32>
    %23 = arith.select %21, %16, %22 : vector<4x2x128xi1>, vector<4x2x128xf32>
    %cst_9 = arith.constant dense<0.000000e+00> : vector<4x128xf32>
    %24 = vector.multi_reduction <add>, %23, %cst_9 [1] : vector<4x2x128xf32> to vector<4x128xf32>
    %cst_10 = arith.constant dense<0.000000e+00> : vector<4x128xf32>
    %25 = vector.multi_reduction <add>, %16, %cst_10 [1] : vector<4x2x128xf32> to vector<4x128xf32>
    %cst_11 = arith.constant 1.000000e+00 : f32
    %cst_12 = arith.constant 0.000000e+00 : f32
    %26 = vector.broadcast %cst_11 : f32 to vector<4x2x128xf32>
    %27 = vector.broadcast %cst_12 : f32 to vector<4x2x128xf32>
    %28 = arith.select %21, %26, %27 : vector<4x2x128xi1>, vector<4x2x128xf32>
    %cst_13 = arith.constant dense<0.000000e+00> : vector<4x128xf32>
    %29 = vector.multi_reduction <add>, %28, %cst_13 [1] : vector<4x2x128xf32> to vector<4x128xf32>
    %cst_14 = arith.constant 0.000000e+00 : f32
    %30 = vector.broadcast %cst_14 : f32 to vector<4x2x128xf32>
    %31 = arith.select %21, %4, %30 : vector<4x2x128xi1>, vector<4x2x128xf32>
    %cst_15 = arith.constant dense<0.000000e+00> : vector<4x128xf32>
    %32 = vector.multi_reduction <add>, %31, %cst_15 [1] : vector<4x2x128xf32> to vector<4x128xf32>
    %c0_16 = arith.constant 0 : index
    %c0_17 = arith.constant 0 : index
    %c0_18 = arith.constant 0 : index
    %c0_19 = arith.constant 0 : index
    %c0_20 = arith.constant 0 : index
    %33 = vector.load %arg5[%c0_16, %c0_17, %c0_18, %c0_19, %c0_20] : memref<1x1x4x4x128xf32, #tpu.memory_space<vmem>>, vector<1x1x1x4x128xf32>
    %34 = vector.shape_cast %33 : vector<1x1x1x4x128xf32> to vector<4x128xf32>
    %35 = arith.addf %34, %24 : vector<4x128xf32>
    %c0_21 = arith.constant 0 : index
    %c0_22 = arith.constant 0 : index
    %c0_23 = arith.constant 0 : index
    %c0_24 = arith.constant 0 : index
    %c0_25 = arith.constant 0 : index
    %36 = vector.load %arg5[%c0_21, %c0_22, %c0_23, %c0_24, %c0_25] : memref<1x1x4x4x128xf32, #tpu.memory_space<vmem>>, vector<1x1x1x4x128xf32>
    %37 = vector.shape_cast %36 : vector<1x1x1x4x128xf32> to vector<4x128xf32>
    %38 = vector.shape_cast %35 : vector<4x128xf32> to vector<1x1x1x4x128xf32>
    tpu.vector_store %arg5[%c0_21, %c0_22, %c0_23, %c0_24, %c0_25], %38 {strides = array<i32>} : memref<1x1x4x4x128xf32, #tpu.memory_space<vmem>>, vector<1x1x1x4x128xf32>,
    %c0_26 = arith.constant 0 : index
    %c0_27 = arith.constant 0 : index
    %c1 = arith.constant 1 : index
    %c0_28 = arith.constant 0 : index
    %c0_29 = arith.constant 0 : index
    %39 = vector.load %arg5[%c0_26, %c0_27, %c1, %c0_28, %c0_29] : memref<1x1x4x4x128xf32, #tpu.memory_space<vmem>>, vector<1x1x1x4x128xf32>
    %40 = vector.shape_cast %39 : vector<1x1x1x4x128xf32> to vector<4x128xf32>
    %41 = arith.addf %40, %25 : vector<4x128xf32>
    %c0_30 = arith.constant 0 : index
    %c0_31 = arith.constant 0 : index
    %c1_32 = arith.constant 1 : index
    %c0_33 = arith.constant 0 : index
    %c0_34 = arith.constant 0 : index
    %42 = vector.load %arg5[%c0_30, %c0_31, %c1_32, %c0_33, %c0_34] : memref<1x1x4x4x128xf32, #tpu.memory_space<vmem>>, vector<1x1x1x4x128xf32>
    %43 = vector.shape_cast %42 : vector<1x1x1x4x128xf32> to vector<4x128xf32>
    %44 = vector.shape_cast %41 : vector<4x128xf32> to vector<1x1x1x4x128xf32>
    tpu.vector_store %arg5[%c0_30, %c0_31, %c1_32, %c0_33, %c0_34], %44 {strides = array<i32>} : memref<1x1x4x4x128xf32, #tpu.memory_space<vmem>>, vector<1x1x1x4x128xf32>,
    %c0_35 = arith.constant 0 : index
    %c0_36 = arith.constant 0 : index
    %c2 = arith.constant 2 : index
    %c0_37 = arith.constant 0 : index
    %c0_38 = arith.constant 0 : index
    %45 = vector.load %arg5[%c0_35, %c0_36, %c2, %c0_37, %c0_38] : memref<1x1x4x4x128xf32, #tpu.memory_space<vmem>>, vector<1x1x1x4x128xf32>
    %46 = vector.shape_cast %45 : vector<1x1x1x4x128xf32> to vector<4x128xf32>
    %47 = arith.addf %46, %29 : vector<4x128xf32>
    %c0_39 = arith.constant 0 : index
    %c0_40 = arith.constant 0 : index
    %c2_41 = arith.constant 2 : index
    %c0_42 = arith.constant 0 : index
    %c0_43 = arith.constant 0 : index
    %48 = vector.load %arg5[%c0_39, %c0_40, %c2_41, %c0_42, %c0_43] : memref<1x1x4x4x128xf32, #tpu.memory_space<vmem>>, vector<1x1x1x4x128xf32>
    %49 = vector.shape_cast %48 : vector<1x1x1x4x128xf32> to vector<4x128xf32>
    %50 = vector.shape_cast %47 : vector<4x128xf32> to vector<1x1x1x4x128xf32>
    tpu.vector_store %arg5[%c0_39, %c0_40, %c2_41, %c0_42, %c0_43], %50 {strides = array<i32>} : memref<1x1x4x4x128xf32, #tpu.memory_space<vmem>>, vector<1x1x1x4x128xf32>,
    %c0_44 = arith.constant 0 : index
    %c0_45 = arith.constant 0 : index
    %c3 = arith.constant 3 : index
    %c0_46 = arith.constant 0 : index
    %c0_47 = arith.constant 0 : index
    %51 = vector.load %arg5[%c0_44, %c0_45, %c3, %c0_46, %c0_47] : memref<1x1x4x4x128xf32, #tpu.memory_space<vmem>>, vector<1x1x1x4x128xf32>
    %52 = vector.shape_cast %51 : vector<1x1x1x4x128xf32> to vector<4x128xf32>
    %53 = arith.addf %52, %32 : vector<4x128xf32>
    %c0_48 = arith.constant 0 : index
    %c0_49 = arith.constant 0 : index
    %c3_50 = arith.constant 3 : index
    %c0_51 = arith.constant 0 : index
    %c0_52 = arith.constant 0 : index
    %54 = vector.load %arg5[%c0_48, %c0_49, %c3_50, %c0_51, %c0_52] : memref<1x1x4x4x128xf32, #tpu.memory_space<vmem>>, vector<1x1x1x4x128xf32>
    %55 = vector.shape_cast %54 : vector<1x1x1x4x128xf32> to vector<4x128xf32>
    %56 = vector.shape_cast %53 : vector<4x128xf32> to vector<1x1x1x4x128xf32>
    tpu.vector_store %arg5[%c0_48, %c0_49, %c3_50, %c0_51, %c0_52], %56 {strides = array<i32>} : memref<1x1x4x4x128xf32, #tpu.memory_space<vmem>>, vector<1x1x1x4x128xf32>,
    return
  }
  func.func @transform_0(%arg0: i32, %arg1: i32, %arg2: i32) -> (i32, i32, i32, i32) {
    %c1_i32 = arith.constant 1 : i32
    %0 = arith.muli %arg1, %c1_i32 : i32
    %1 = arith.addi %0, %arg2 : i32
    %c0_i32 = arith.constant 0 : i32
    %c0_i32_0 = arith.constant 0 : i32
    %c0_i32_1 = arith.constant 0 : i32
    return %arg0, %c0_i32, %1, %c0_i32_0 : i32, i32, i32, i32
  }
  func.func @transform_1(%arg0: i32, %arg1: i32, %arg2: i32) -> (i32, i32, i32) {
    %c1_i32 = arith.constant 1 : i32
    %0 = arith.muli %arg1, %c1_i32 : i32
    %1 = arith.addi %0, %arg2 : i32
    %c0_i32 = arith.constant 0 : i32
    %c0_i32_0 = arith.constant 0 : i32
    return %arg0, %1, %c0_i32 : i32, i32, i32
  }
  func.func @transform_2(%arg0: i32, %arg1: i32, %arg2: i32) -> (i32, i32, i32, i32, i32) {
    %c0_i32 = arith.constant 0 : i32
    %c0_i32_0 = arith.constant 0 : i32
    %c0_i32_1 = arith.constant 0 : i32
    %c0_i32_2 = arith.constant 0 : i32
    return %arg0, %arg1, %c0_i32, %c0_i32_0, %c0_i32_1 : i32, i32, i32, i32, i32
  }
}

</mosaic_0001>

<bundles_post_ra>
// kernel: tpu_custom_call.1
= control target key start
LH: loop header
LB: loop body
LE: loop exit
PB: predicated region body
PF: predicated region fallthrough
CT: control target
= control target key end

     0   :  { %7 = vsyncpa [#allocation3], 0  ;;  %s1166_s0 = inlined_call_operand.hbm [shape: f32[2,4,2,128], index: 0, kind: input, shape index: {}]   ;;  %s1167_s1 = inlined_call_operand.hbm [shape: s32[2,2,128], index: 1, kind: input, shape index: {}]   ;;  %s1168_s2 = inlined_call_operand.hbm [shape: f32[2,1,4,4,128], index: 2, kind: output, shape index: {}]  }
   0x1   :  { %9 = vsyncpa [#allocation3 + $0x1], 0 }
   0x2   :  { %10 = vsyncpa [#allocation6], 0 }
   0x3   :  { %12 = vsyncpa [#allocation6 + $0x1], 0 }
   0x4   :  { %13 = vsyncpa [#allocation4], 0 }
   0x5   :  { %15 = vsyncpa [#allocation4 + $0x1], 0  ;;  %s867_s9 = smov 0   ;;  %s869_s10 = smov 0  }
   0x6   :  { %s871_s11 = smov 0   ;;  %s873_s12 = smov 0  }
   0x7   :  { %s875_s13 = smov 0   ;;  %s877_s14 = smov 0  }
   0x8 LB: > { %s588_s15 = sadd.s32 4294967295, %s842_s14   ;;  %s589_s16 = sadd.s32 4294967294, %s842_s14   ;;  %s842_s14 = sphi %s877_s14, %s21_s14   ;;  %s838_s13 = sphi %s875_s13, %s1187_s13   ;;  %s834_s12 = sphi %s873_s12, %s1186_s12   ;;  %s830_s11 = sphi %s871_s11, %s1185_s11   ;;  %s826_s10 = sphi %s869_s10, %s1184_s10   ;;  %s822_s9 = sphi %s867_s9, %s1183_s9  }
   0x9   : > { %s40_s17 = sadd.s32 1, %s838_s13  ;;  %s51_s18 = sadd.s32 1, %s830_s11 }
   0xa   : > { %p42_p0 = scmp.ge.s32.totalorder %s40_s17, 2  ;;  %p58_p1 = scmp.ne.s32.totalorder %s830_s11, %s826_s10 }
   0xb   : > { %p59_p2 = scmp.eq.s32.totalorder %s842_s14, 0  ;;  %p64_p3 = scmp.ne.s32.totalorder %s826_s10, %s822_s9 }
   0xc   : > { %s1189_s17 = smov (%p42_p0, %s40_s17), 0  ;;  %p65_p5 = scmp.eq.s32.totalorder %s588_s15, 0 }
   0xd   : > { %p908_p4 = por %p59_p2, %p58_p1  ;;  %s46_s20 = ssub.s32 %s838_s13, %s1189_s17 }
   0xe   : > { %p120_p6 = scmp.eq.s32.totalorder %s588_s15, 1  ;;  %p49_p7 = scmp.eq.s32.totalorder %s46_s20, 0 }
   0xf   : > { %p914_p8 = por %p65_p5, %p64_p3  ;;  %p126_p10 = scmp.eq.s32.totalorder %s589_s16, 1 }
  0x10   : > { %p918_p9 = por %p120_p6, %p58_p1  ;;  %p631_p13 = scmp.lt.s32.totalorder %s842_s14, 2 }
  0x11   : > { %s1172_s21 = scalar_select %p914_p8, 1, 0 }
  0x12   : > { %s1173_s22 = scalar_select %p918_p9, 1, 0 }
  0x13   : > { %s923_s23 = scalar_select %p49_p7, %s830_s11, %s51_s18  }
  0x14   : > { %p925_p11 = por %p126_p10, %p64_p3  ;;  %s932_s25 = sand.u32 1, %s830_s11  }
  0x15   : > { %s592_s26 = sshll.u32 %s932_s25, 3  ;;  %s612_s27 = sshll.u32 %s838_s13, 7 }
  0x16   : > { %s1174_s24 = scalar_select %p925_p11, 1, 0 }
  0x17   : > { %s939_s30 = scalar_lea.hbm %s1166_s0, %s612_s27  ;;  %s150_s3 = scalar_lea.vmem [#allocation2], %s592_s26 }
  0x18   : > { %s159_s4 = sshll.u32 %s150_s3, 4  ;;  %p945_p0 = pnand %p631_p13, %p908_p4  ;;  %s941_s4 = int_to_ptr.vmem [resolvable:$true] %s159_s4 }
  0x19   : > { %s147_s6 = scalar_lea.sflag [#allocation3], %s932_s25  ;;  %s696_s7 = scalar_lea.hbm %s939_s30, 128 }
  0x1a   : > { %p697_p2 = scmp.ne.s32.totalorder %s939_s30, %s696_s7  ;;  %p698_p3 = pneg %p945_p0 }
  0x1b   : > { %s701_s16 = scalar_lea.hbm %s1166_s0, 256  ;;  %p702_p4 = scmp.lt.u32.totalorder %s939_s30, %s1166_s0 }
  0x1c   : > { %p699_p5 = pnand %p698_p3, %p697_p2  ;;  %p703_p7 = scmp.lt.u32.totalorder %s701_s16, %s696_s7 }
  0x1d   : > { %p705_p13 = scmp.lt.u32.totalorder %s696_s7, %s939_s30 }
  0x1e   : > { %p700_p6 = pneg %p699_p5  ;;  %p704_p10 = por %p703_p7, %p702_p4 }
  0x20   : > { %p706_p12 = por %p705_p13, %p704_p10 }
  0x22   : > { %p707_p1 = pnand %p706_p12, %p700_p6 }
  0x24   : > { %710 = shalt.err (!%p707_p1)
}
  0x25   : > { %s711_s20 = scalar_lea.vmem %s941_s4, 128  ;;  %s844_s26 = smov [#allocation2]  }
  0x26   : > { %p712_p2 = scmp.ne.s32.totalorder %s941_s4, %s711_s20  ;;  %s716_s27 = sshll.u32 %s844_s26, 4  ;;  %s717_s27 = int_to_ptr.vmem [resolvable:$false] %s716_s27 }
  0x27   : > { %s718_s28 = scalar_lea.vmem %s717_s27, 256  ;;  %p719_p9 = scmp.lt.s32.totalorder %s941_s4, %s717_s27 }
  0x28   : > { %p714_p5 = pnand %p712_p2, %p698_p3  ;;  %p720_p4 = scmp.lt.s32.totalorder %s718_s28, %s711_s20 }
  0x2a   : > { %p715_p11 = pneg %p714_p5  ;;  %p721_p7 = por %p720_p4, %p719_p9 }
  0x2c   : > { %p722_p10 = pnand %p721_p7, %p715_p11 }
  0x2e   : > { %725 = shalt.err (!%p722_p10)
}
  0x2f   : > { %s845_s29 = smov 32   ;;  %s846_s3 = smov 2  }
  0x30   : > { %623 = dma.hbm_to_vmem [thread:$0]  (!%p945_p0), %s939_s30, 128, %s941_s4, %s147_s6, %s845_s29, %s845_s29, %s846_s3  }
  0x31   : > { %p187_p12 = scmp.lt.s32.totalorder %s842_s14, 3  ;;  %s595_s7 = sshll.u32 %s932_s25, 1 }
  0x32   : > { %s596_s8 = sshll.u32 %s838_s13, 5  ;;  %p1176_p9 = scmp.ge.s32.totalorder %s842_s14, 1 }
  0x33   : > { %s990_s19 = scalar_lea.hbm %s1167_s1, %s596_s8  ;;  %s173_s20 = scalar_lea.vmem [#allocation5], %s595_s7 }
  0x34   : > { %p983_p11 = pnand %p1176_p9, %p187_p12  ;;  %s182_s26 = sshll.u32 %s173_s20, 4  ;;  %s183_s26 = int_to_ptr.vmem [resolvable:$true] %s182_s26 }
  0x35   : > { %s170_s30 = scalar_lea.sflag [#allocation6], %s932_s25  ;;  %s726_s4 = scalar_lea.hbm %s990_s19, 32 }
  0x36   : > { %s1177_s15 = scalar_select %p983_p11, 1, 0 }
  0x37   : > { %p727_p1 = scmp.ne.s32.totalorder %s990_s19, %s726_s4  ;;  %s731_s28 = scalar_lea.hbm %s1167_s1, 64 }
  0x38   : > { %p732_p2 = scmp.lt.u32.totalorder %s990_s19, %s1167_s1  ;;  %p733_p5 = scmp.lt.u32.totalorder %s731_s28, %s726_s4 }
  0x39   : > { %p729_p6 = pnand %p727_p1, %p698_p3  ;;  %p735_p7 = scmp.lt.u32.totalorder %s726_s4, %s990_s19 }
  0x3a   : > { %p734_p4 = por %p733_p5, %p732_p2 }
  0x3b   : > { %p730_p13 = pneg %p729_p6 }
  0x3c   : > { %p736_p10 = por %p735_p7, %p734_p4 }
  0x3e   : > { %p737_p12 = pnand %p736_p10, %p730_p13 }
  0x40   : > { %740 = shalt.err (!%p737_p12)
}
  0x41   : > { %s741_s25 = scalar_lea.vmem %s183_s26, 32  ;;  %s847_s7 = smov [#allocation5]  }
  0x42   : > { %p742_p9 = scmp.ne.s32.totalorder %s183_s26, %s741_s25  ;;  %s746_s8 = sshll.u32 %s847_s7, 4  ;;  %s747_s8 = int_to_ptr.vmem [resolvable:$false] %s746_s8 }
  0x43   : > { %s748_s16 = scalar_lea.vmem %s747_s8, 64  ;;  %p749_p8 = scmp.lt.s32.totalorder %s183_s26, %s747_s8 }
  0x44   : > { %p744_p1 = pnand %p742_p9, %p698_p3  ;;  %p750_p11 = scmp.lt.s32.totalorder %s748_s16, %s741_s25 }
  0x46   : > { %p745_p6 = pneg %p744_p1  ;;  %p751_p2 = por %p750_p11, %p749_p8 }
  0x48   : > { %p752_p5 = pnand %p751_p2, %p745_p6 }
  0x4a   : > { %755 = shalt.err (!%p752_p5)
}
  0x4b   : > { %626 = dma.hbm_to_vmem [thread:$0]  (!%p945_p0), %s990_s19, 32, %s183_s26, %s170_s30  }
  0x4c   : > { %p1178_p13 = scmp.ne.s32.totalorder %s1177_s15, 0 }
  0x4d   : > { %s1015_s18 = sand.u32 (!%p1178_p13), 1, %s826_s10   ;;  %p1179_p3 = scmp.ne.s32.totalorder (!%p1178_p13), %s1172_s21, 0 }
  0x4e   : > { %191 = sbr.rel (%p1178_p13) target bundleno = 171 (0xab), region = 28  ;;  %s598_s20 = sshll.u32 (!%p1178_p13), %s1015_s18, 3 }
  0x4f   : > { %s194_s4 = scalar_lea.sflag (!%p1178_p13), [#allocation3], %s1015_s18  ;;  %s197_s6 = scalar_lea.vmem (!%p1178_p13), [#allocation2], %s598_s20 }
  0x55   : > { %809 = dma.done.wait (%p1179_p3), %s194_s4, 128  }
  0x56   : > { %811 = vsyncadd (%p1179_p3), %s194_s4, 4294967168  ;;  %s599_s5 = sshll.u32 %s1015_s18, 1  ;;  %s203_s15 = scalar_lea.sflag [#allocation6], %s1015_s18 }
  0x57   : > { %s206_s19 = scalar_lea.vmem [#allocation5], %s599_s5 }
  0x58   : > { %813 = dma.done.wait (%p1179_p3), %s203_s15, 32  }
  0x59   : > { %815 = vsyncadd (%p1179_p3), %s203_s15, 4294967264  ;;  %s600_s26 = sshll.u32 %s1015_s18, 4  ;;  %v848_v0 = vmov 0.0   ;;  %vm247_vm0 = vcmask 1041408   ;;  %v242_v1 = vld [vmem:[%s197_s6] sm:$0x3] }
  0x5a   : > { %s1030_s30 = scalar_lea.vmem [#allocation7], %s600_s26  ;;  %v243_v2 = vld [vmem:[%s197_s6 + $0x2] sm:$0x3]  ;;  %v244_v3 = vld [vmem:[%s197_s6 + $0x4] sm:$0x3]  ;;  %v248_v6 = vsel %vm247_vm0, %v242_v1, -inf }
  0x5b   : > { %238 = vst [vmem:[%s1030_s30] sm:$0xf] %v848_v0  ;;  %239 = vst [vmem:[%s1030_s30 + $0x4] sm:$0xf] %v848_v0  ;;  %v245_v4 = vld [vmem:[%s197_s6 + $0x6] sm:$0x3]  ;;  %v249_v7 = vsel %vm247_vm0, %v243_v2, -inf }
  0x5c   : > { %240 = vst [vmem:[%s1030_s30 + $0x8] sm:$0xf] %v848_v0  ;;  %241 = vst [vmem:[%s1030_s30 + $0xc] sm:$0xf] %v848_v0  ;;  %v1036_v5 = vld [vmem:[%s206_s19] sm:$0x3]  ;;  %v252_v10 = vmax.f32 %v248_v6, %v249_v7 }
  0x5d   : > { %v250_v8 = vsel %vm247_vm0, %v244_v3, -inf  ;;  %v251_v9 = vsel %vm247_vm0, %v245_v4, -inf  ;;  %vm279_vm1 = vcmp.eq.s32.totalorder %v1036_v5, 0  ;;  %vm280_vm2 = vcmp.eq.s32.totalorder %v1036_v5, 1  ;;  %s613_s21 = sshll.u32 %s834_s12, 8  ;;  %s473_s27 = sshll.u32 %s1030_s30, 4  ;;  %s1116_s27 = int_to_ptr.vmem [resolvable:$true] %s473_s27 }
  0x5e   : > { %v253_v11 = vmax.f32 %v250_v8, %v251_v9  ;;  %vm281_vm3 = vcmp.eq.s32.totalorder %v1036_v5, 2  ;;  %vm282_vm4 = vcmp.eq.s32.totalorder %v1036_v5, 3  ;;  %v343_v12 = vsel %vm279_vm1, 1.0, %v848_v0  ;;  %s1114_s3 = scalar_lea.hbm %s1168_s2, %s613_s21  ;;  %s458_s12 = scalar_lea.sflag [#allocation4], %s1015_s18 }
  0x5f   : > { %v344_v13 = vsel %vm280_vm2, 1.0, %v848_v0  ;;  %v345_v14 = vsel %vm281_vm3, 1.0, %v848_v0  ;;  %v346_v15 = vsel %vm282_vm4, 1.0, %v848_v0  ;;  %v347_v17 = vsel %vm247_vm0, %v343_v12, 0.0  ;;  %s756_s25 = scalar_lea.vmem %s1116_s27, 256  ;;  %p1180_p0 = scmp.ne.s32.totalorder %s1173_s22, 0 }
  0x60   : > { %v254_v16 = vmax.f32 %v252_v10, %v253_v11  ;;  %v354_v18 = vsel %vm247_vm0, %v344_v13, 0.0  ;;  %v361_v19 = vsel %vm247_vm0, %v345_v14, 0.0  ;;  %v348_v20 = vrot.slane %v347_v17, 4  ;;  %p757_p8 = scmp.ne.s32.totalorder %s1116_s27, %s756_s25  ;;  %s849_s7 = smov [#allocation7]  }
  0x61   : > { %v355_v21 = vrot.slane %v354_v18, 4  ;;  %v362_v22 = vrot.slane %v361_v19, 4  ;;  %v368_v23 = vsel %vm247_vm0, %v346_v15, 0.0  ;;  %vm412_vm5 = vcmask 1041409   ;;  %s760_s8 = sshll.u32 %s849_s7, 4  ;;  %s761_s8 = int_to_ptr.vmem [resolvable:$false] %s760_s8 }
  0x62   : > { %v255_v24 = vsub.f32 %v242_v1, %v254_v16  ;;  %v256_v25 = vsub.f32 %v243_v2, %v254_v16  ;;  %v257_v26 = vsub.f32 %v244_v3, %v254_v16  ;;  %v258_v27 = vsub.f32 %v245_v4, %v254_v16  ;;  %p758_p11 = pnand %p757_p8, %p1180_p0  ;;  %s762_s16 = scalar_lea.vmem %s761_s8, 512 }
  0x63   : > { %vm414_vm6 = vcmask 1042434   ;;  %v349_v28 = vadd.f32 %v348_v20, %v347_v17  ;;  %v356_v29 = vadd.f32 %v355_v21, %v354_v18  ;;  %v363_v30 = vadd.f32 %v362_v22, %v361_v19  ;;  %p763_p7 = scmp.lt.s32.totalorder %s1116_s27, %s761_s8  ;;  %p764_p10 = scmp.lt.s32.totalorder %s762_s16, %s756_s25 }
  0x64   : > { %v369_v31 = vrot.slane %v368_v23, 4  ;;  %v259_v32 = vmul.f32 1.442695, %v255_v24  ;;  %v261_v33 = vmul.f32 1.442695, %v256_v25  ;;  %v375_v40 = vsel %vm279_vm1, %v242_v1, 0.0  ;;  %p759_p4 = pneg %p758_p11 }
  0x65   : > { %v263_v34 = vmul.f32 1.442695, %v257_v26  ;;  %v265_v35 = vmul.f32 1.442695, %v258_v27  ;;  %v350_v36 = vrot.slane %v349_v28, 2  ;;  %v357_v37 = vrot.slane %v356_v29, 2  ;;  %p765_p12 = por %p764_p10, %p763_p7 }
  0x66   : > { %v364_v38 = vrot.slane %v363_v30, 2  ;;  %686 = vpow2.f32 %v259_v32  ;;  %v370_v39 = vadd.f32 %v369_v31, %v368_v23  ;;  %v376_v41 = vsel %vm280_vm2, %v243_v2, 0.0 }
  0x67   : > { %688 = vpow2.f32 %v261_v33  ;;  %v351_v42 = vadd.f32 %v350_v36, %v349_v28  ;;  %v358_v43 = vadd.f32 %v357_v37, %v356_v29  ;;  %v377_v46 = vsel %vm281_vm3, %v244_v3, 0.0  ;;  %v603_v3 = vld [vmem:[%s1030_s30 + $0x8] sm:$0xf]  ;;  %p766_p9 = pnand %p765_p12, %p759_p4 }
  0x68   : > { %v365_v44 = vadd.f32 %v364_v38, %v363_v30  ;;  %690 = vpow2.f32 %v263_v34  ;;  %v371_v45 = vrot.slane %v370_v39, 2  ;;  %v378_v47 = vsel %vm282_vm4, %v245_v4, 0.0  ;;  %v605_v38 = vld [vmem:[%s1030_s30 + $0xc] sm:$0xf] }
  0x69   : > { %692 = vpow2.f32 %v265_v35  ;;  %v352_v48 = vrot.slane %v351_v42, 1  ;;  %v359_v49 = vrot.slane %v358_v43, 1  ;;  %v379_v52 = vsel %vm247_vm0, %v375_v40, 0.0 }
  0x6a   : > { %v366_v50 = vrot.slane %v365_v44, 1  ;;  %v372_v51 = vadd.f32 %v371_v45, %v370_v39  ;;  %v386_v53 = vsel %vm247_vm0, %v376_v41, 0.0  ;;  %v393_v54 = vsel %vm247_vm0, %v377_v46, 0.0 }
  0x6b   : > { %v353_v55 = vadd.f32 %v352_v48, %v351_v42  ;;  %v360_v56 = vadd.f32 %v359_v49, %v358_v43  ;;  %v380_v58 = vrot.slane %v379_v52, 4  ;;  %v387_v60 = vrot.slane %v386_v53, 4 }
  0x6c   : > { %v367_v57 = vadd.f32 %v366_v50, %v365_v44  ;;  %v373_v59 = vrot.slane %v372_v51, 1  ;;  %v394_v61 = vrot.slane %v393_v54, 4  ;;  %v400_v62 = vsel %vm247_vm0, %v378_v47, 0.0 }
  0x6d   : > { %vm416_vm7 = vcmask 1043459   ;;  %v439_v63 = vsel %vm412_vm5, %v360_v56, %v353_v55  ;;  %v381_v0 = vadd.f32 %v380_v58, %v379_v52  ;;  %v401_v1 = vrot.slane %v400_v62, 4 }
  0x6e   : > { %v374_v2 = vadd.f32 %v373_v59, %v372_v51  ;;  %v440_v4 = vsel %vm414_vm6, %v367_v57, %v439_v63  ;;  %v388_v6 = vadd.f32 %v387_v60, %v386_v53  ;;  %v395_v7 = vadd.f32 %v394_v61, %v393_v54 }
  0x6f   : > { %v382_v8 = vrot.slane %v381_v0, 2  ;;  %v402_v9 = vadd.f32 %v401_v1, %v400_v62 }
  0x70   : > { %v687_v10 = vpop.eup %686  ;;  %v441_v11 = vsel %vm416_vm7, %v374_v2, %v440_v4  ;;  %v389_v12 = vrot.slane %v388_v6, 2  ;;  %v396_v13 = vrot.slane %v395_v7, 2 }
  0x71   : > { %v689_v14 = vpop.eup %688  ;;  %v267_v15 = vsel %vm247_vm0, %v687_v10, 0.0  ;;  %v443_v16 = vadd.f32 %v603_v3, %v441_v11  ;;  %v383_v17 = vadd.f32 %v382_v8, %v381_v0  ;;  %v403_v18 = vrot.slane %v402_v9, 2 }
  0x72   : > { %v691_v19 = vpop.eup %690  ;;  %v268_v20 = vsel %vm247_vm0, %v689_v14, 0.0  ;;  %v390_v21 = vadd.f32 %v389_v12, %v388_v6  ;;  %v397_v22 = vadd.f32 %v396_v13, %v395_v7 }
  0x73   : > { %v693_v23 = vpop.eup %692  ;;  %v269_v24 = vadd.f32 %v268_v20, %v267_v15  ;;  %v270_v25 = vsel %vm247_vm0, %v691_v19, 0.0  ;;  %604 = vst [vmem:[%s1030_s30 + $0x8] sm:$0xf] %v443_v16  ;;  %v384_v26 = vrot.slane %v383_v17, 1  ;;  %v404_v27 = vadd.f32 %v403_v18, %v402_v9 }
  0x74   : > { %v272_v28 = vsel %vm247_vm0, %v693_v23, 0.0  ;;  %v391_v29 = vrot.slane %v390_v21, 1  ;;  %v398_v30 = vrot.slane %v397_v22, 1 }
  0x75   : > { %v271_v31 = vadd.f32 %v270_v25, %v269_v24  ;;  %v385_v32 = vadd.f32 %v384_v26, %v383_v17  ;;  %v405_v33 = vrot.slane %v404_v27, 1 }
  0x76   : > { %v392_v34 = vadd.f32 %v391_v29, %v390_v21  ;;  %v399_v35 = vadd.f32 %v398_v30, %v397_v22 }
  0x77   : > { %v273_v36 = vadd.f32 %v272_v28, %v271_v31  ;;  %v406_v37 = vadd.f32 %v405_v33, %v404_v27 }
  0x78   : > { %v451_v39 = vsel %vm412_vm5, %v392_v34, %v385_v32 }
  0x79   : > { %694 = vrcp.f32 %v273_v36  ;;  %v452_v40 = vsel %vm414_vm6, %v399_v35, %v451_v39 }
  0x7a   : > { %v453_v41 = vsel %vm416_vm7, %v406_v37, %v452_v40  ;;  %v407_v40 = vld [vmem:[%s1030_s30] sm:$0xf] }
  0x7b   : > { %v455_v42 = vadd.f32 %v605_v38, %v453_v41 }
  0x7d   : > { %606 = vst [vmem:[%s1030_s30 + $0xc] sm:$0xf] %v455_v42 }
  0x83   : > { %v695_v43 = vpop.eup %694 }
  0x84   : > { %v275_v44 = vmul.f32 %v695_v43, %v687_v10  ;;  %v276_v45 = vmul.f32 %v695_v43, %v689_v14  ;;  %v277_v46 = vmul.f32 %v695_v43, %v691_v19  ;;  %v278_v47 = vmul.f32 %v695_v43, %v693_v23 }
  0x86   : > { %v283_v48 = vsel %vm279_vm1, %v275_v44, 0.0  ;;  %v284_v49 = vsel %vm280_vm2, %v276_v45, 0.0  ;;  %v285_v50 = vsel %vm281_vm3, %v277_v46, 0.0  ;;  %v286_v51 = vsel %vm282_vm4, %v278_v47, 0.0 }
  0x87   : > { %v287_v52 = vsel %vm247_vm0, %v283_v48, 0.0  ;;  %v294_v53 = vsel %vm247_vm0, %v284_v49, 0.0  ;;  %v301_v54 = vsel %vm247_vm0, %v285_v50, 0.0  ;;  %v308_v55 = vsel %vm247_vm0, %v286_v51, 0.0  ;;  %v601_v49 = vld [vmem:[%s1030_s30 + $0x4] sm:$0xf] }
  0x88   : > { %v288_v56 = vrot.slane %v287_v52, 4  ;;  %v295_v57 = vrot.slane %v294_v53, 4  ;;  %v302_v58 = vrot.slane %v301_v54, 4  ;;  %v309_v59 = vrot.slane %v308_v55, 4 }
  0x89   : > { %v315_v60 = vsel %vm247_vm0, %v275_v44, 0.0  ;;  %v322_v61 = vsel %vm247_vm0, %v276_v45, 0.0  ;;  %v329_v62 = vsel %vm247_vm0, %v277_v46, 0.0  ;;  %v336_v5 = vsel %vm247_vm0, %v278_v47, 0.0 }
  0x8a   : > { %v289_v63 = vadd.f32 %v288_v56, %v287_v52  ;;  %v296_v0 = vadd.f32 %v295_v57, %v294_v53  ;;  %v303_v1 = vadd.f32 %v302_v58, %v301_v54  ;;  %v310_v2 = vadd.f32 %v309_v59, %v308_v55 }
  0x8b   : > { %v316_v3 = vrot.slane %v315_v60, 4  ;;  %v323_v4 = vrot.slane %v322_v61, 4  ;;  %v330_v6 = vrot.slane %v329_v62, 4  ;;  %v337_v7 = vrot.slane %v336_v5, 4 }
  0x8c   : > { %v290_v8 = vrot.slane %v289_v63, 2  ;;  %v297_v9 = vrot.slane %v296_v0, 2  ;;  %v304_v10 = vrot.slane %v303_v1, 2  ;;  %v311_v11 = vrot.slane %v310_v2, 2 }
  0x8d   : > { %v317_v12 = vadd.f32 %v316_v3, %v315_v60  ;;  %v324_v13 = vadd.f32 %v323_v4, %v322_v61  ;;  %v331_v14 = vadd.f32 %v330_v6, %v329_v62  ;;  %v338_v15 = vadd.f32 %v337_v7, %v336_v5 }
  0x8e   : > { %v291_v16 = vadd.f32 %v290_v8, %v289_v63  ;;  %v298_v17 = vadd.f32 %v297_v9, %v296_v0  ;;  %v305_v18 = vadd.f32 %v304_v10, %v303_v1  ;;  %v312_v19 = vadd.f32 %v311_v11, %v310_v2 }
  0x8f   : > { %v318_v20 = vrot.slane %v317_v12, 2  ;;  %v325_v21 = vrot.slane %v324_v13, 2  ;;  %v332_v22 = vrot.slane %v331_v14, 2  ;;  %v339_v23 = vrot.slane %v338_v15, 2 }
  0x90   : > { %v292_v24 = vrot.slane %v291_v16, 1  ;;  %v299_v25 = vrot.slane %v298_v17, 1  ;;  %v306_v26 = vrot.slane %v305_v18, 1  ;;  %v313_v27 = vrot.slane %v312_v19, 1 }
  0x91   : > { %v319_v28 = vadd.f32 %v318_v20, %v317_v12  ;;  %v326_v29 = vadd.f32 %v325_v21, %v324_v13  ;;  %v333_v30 = vadd.f32 %v332_v22, %v331_v14  ;;  %v340_v31 = vadd.f32 %v339_v23, %v338_v15 }
  0x92   : > { %v293_v32 = vadd.f32 %v292_v24, %v291_v16  ;;  %v300_v33 = vadd.f32 %v299_v25, %v298_v17  ;;  %v307_v34 = vadd.f32 %v306_v26, %v305_v18  ;;  %v314_v35 = vadd.f32 %v313_v27, %v312_v19 }
  0x93   : > { %v320_v36 = vrot.slane %v319_v28, 1  ;;  %v327_v37 = vrot.slane %v326_v29, 1  ;;  %v334_v38 = vrot.slane %v333_v30, 1  ;;  %v341_v39 = vrot.slane %v340_v31, 1 }
  0x94   : > { %v413_v41 = vsel %vm412_vm5, %v300_v33, %v293_v32 }
  0x95   : > { %v415_v42 = vsel %vm414_vm6, %v307_v34, %v413_v41  ;;  %v321_v43 = vadd.f32 %v320_v36, %v319_v28  ;;  %v328_v44 = vadd.f32 %v327_v37, %v326_v29  ;;  %v335_v45 = vadd.f32 %v334_v38, %v333_v30 }
  0x96   : > { %v417_v46 = vsel %vm416_vm7, %v314_v35, %v415_v42  ;;  %v342_v47 = vadd.f32 %v341_v39, %v340_v31 }
  0x97   : > { %v419_v48 = vadd.f32 %v417_v46, %v407_v40  ;;  %v427_v50 = vsel %vm412_vm5, %v328_v44, %v321_v43 }
  0x98   : > { %v428_v51 = vsel %vm414_vm6, %v335_v45, %v427_v50 }
  0x99   : > { %420 = vst [vmem:[%s1030_s30] sm:$0xf] %v419_v48  ;;  %v429_v52 = vsel %vm416_vm7, %v342_v47, %v428_v51 }
  0x9a   : > { %v431_v53 = vadd.f32 %v601_v49, %v429_v52 }
  0x9c   : > { %602 = vst [vmem:[%s1030_s30 + $0x4] sm:$0xf] %v431_v53 }
  0x9d   : > { %769 = shalt.err (!%p766_p9)
}
  0x9e   : > { %s770_s20 = scalar_lea.hbm %s1114_s3, 256  ;;  %s774_s5 = scalar_lea.hbm %s1168_s2, 512 }
  0x9f   : > { %p771_p1 = scmp.ne.s32.totalorder %s1114_s3, %s770_s20  ;;  %p775_p5 = scmp.lt.u32.totalorder %s1114_s3, %s1168_s2 }
  0xa0   : > { %p776_p13 = scmp.lt.u32.totalorder %s774_s5, %s770_s20  ;;  %p778_p8 = scmp.lt.u32.totalorder %s770_s20, %s1114_s3 }
  0xa1   : > { %p772_p6 = pnand %p771_p1, %p1180_p0 }
  0xa2   : > { %p777_p3 = por %p776_p13, %p775_p5 }
  0xa3   : > { %p773_p2 = pneg %p772_p6 }
  0xa4   : > { %p779_p11 = por %p778_p8, %p777_p3 }
  0xa6   : > { %p780_p4 = pnand %p779_p11, %p773_p2 }
  0xa8   : > { %783 = shalt.err (!%p780_p4)
}
  0xa9   : > { %s850_s26 = smov 64   ;;  %s851_s30 = smov 4  }
  0xaa   : > { %618 = dma.vmem_to_hbm [thread:$0]  (%p1180_p0), %s1116_s27, 256, %s1114_s3, %s458_s12, %s850_s26, %s850_s26, %s851_s30  }
  0xab PF: > { %s488_s21 = sand.u32 1, %s822_s9   ;;  %p1181_p7 = scmp.ne.s32.totalorder %s1174_s24, 0 }
  0xac   : > { %p1182_p10 = scmp.ge.s32.totalorder %s842_s14, 2  ;;  %s489_s28 = scalar_lea.sflag [#allocation4], %s488_s21 }
  0xae   : > { %p628_p12 = pnand %p1182_p10, %p1181_p7 }
  0xb0   : > { %817 = dma.done.wait (!%p628_p12), %s489_s28, 256  }
  0xb1   : > { %819 = vsyncadd (!%p628_p12), %s489_s28, 4294967040  ;;  %s21_s14 = sadd.s32 1, %s842_s14   ;;  %s1183_s9 = smov %s826_s10 }
  0xb2   : > { %p18_p9 = scmp.ge.s32.totalorder %s21_s14, 4   ;;  %s1184_s10 = smov %s830_s11 }
  0xb3   : > { %s1185_s11 = smov %s923_s23  ;;  %s1186_s12 = smov %s838_s13 }
  0xb4   : > { %s1187_s13 = smov %s1189_s17  ;;  %20 = sbr.rel (!%p18_p9) target bundleno = 8 (0x8), region = 93 }
  0xbb   :  { %494 = vsyncpa [#allocation3], 1 }
  0xbc   :  { %496 = vsyncpa [#allocation3 + $0x1], 1 }
  0xbd   :  { %497 = vsyncpa [#allocation6], 1 }
  0xbe   :  { %499 = vsyncpa [#allocation6 + $0x1], 1 }
  0xbf   :  { %500 = vsyncpa [#allocation4], 1 }
  0xc0   :  { %502 = vsyncpa [#allocation4 + $0x1], 1 }

</bundles_post_ra>
